<compile_context>
chip_gen: v6e
topology: v6e:2x2x1
jax: 0.10.0
libtpu: 0.0.40
codegen_flags: <defaults>
</compile_context>

<pallas_src>
import functools

import jax
import jax.numpy as jnp
from jax.experimental import pallas as pl
from jax.experimental.pallas import tpu as pltpu


# ----------------------------------------------------------------------------- helpers

def _round_up(x, m):
    return (x + m - 1) // m * m


def _cdiv(a, b):
    return -(-a // b)


def _device_kind():
    try:
        return jax.devices()[0].device_kind.lower()
    except Exception:
        return ""


def _gen_defaults(d_model):
    """Generation-aware tile / VMEM defaults."""
    kind = _device_kind()
    if "v7" in kind:
        # 64 MiB VMEM per TC: smaller dff strips at large widths, tighter cap.
        return dict(tm_max=512,
                    tk_ff_max=256 if d_model >= 4096 else 512,
                    vmem_limit=48 * 1024 * 1024)
    if "v6" in kind:
        # ~670 flops/byte roofline -> big row tiles; 128 MiB physical VMEM.
        return dict(tm_max=768, tk_ff_max=512, vmem_limit=100 * 1024 * 1024)
    if "v5" in kind:
        return dict(tm_max=384, tk_ff_max=512, vmem_limit=100 * 1024 * 1024)
    # Unknown backend (e.g. interpret mode): conservative.
    return dict(tm_max=512, tk_ff_max=512, vmem_limit=64 * 1024 * 1024)


def _pick_tk_ff(dff, tk_ff_max):
    """Largest 128-multiple <= tk_ff_max that divides round_up(dff, 128)."""
    f_pad = _round_up(max(dff, 1), 128)
    tk_ff = 128
    cand = (tk_ff_max // 128) * 128
    while cand >= 128:
        if f_pad % cand == 0:
            tk_ff = cand
            break
        cand -= 128
    return tk_ff, f_pad


def _pick_tm(M, tm_max):
    """Balanced row tile: bounds padding waste, keeps >=2 tiles when possible."""
    if M <= 16:
        return 16
    n_tiles = _cdiv(M, tm_max)
    if n_tiles == 1 and M >= 256:
        n_tiles = 2            # keep both TensorCores busy on the row axis
    return _round_up(_cdiv(M, n_tiles), 16)


def _est_vmem_bytes(tm, tk_ff, d_model, cd_bytes, out_bytes):
    x_t   = 2 * tm * d_model * cd_bytes          # double-buffered x tile
    w_ug  = 2 * d_model * 2 * tk_ff * cd_bytes   # fused up+gate strip
    w_dn  = 2 * tk_ff * d_model * cd_bytes       # down-proj strip
    bias  = 2 * d_model * 4
    out_t = 2 * tm * d_model * out_bytes
    acc   = tm * d_model * 4
    return x_t + w_ug + w_dn + bias + out_t + acc


# ----------------------------------------------------------------------------- kernel

def swiglu_ffn_kernel(x_ref, wug_ref, wd_ref, bd_ref, o_ref, acc_ref, *, tk_ff):
    """One (row-tile, dff-strip) grid step of the fused SwiGLU FFN."""
    k = pl.program_id(1)

    @pl.when(k == 0)
    def _init():
        # Fold the down_proj bias into the f32 accumulator init (once per row tile).
        acc_ref[...] = jnp.broadcast_to(bd_ref[...], acc_ref.shape).astype(jnp.float32)

    x = x_ref[...]                                                        # (tm, d_model)
    # Single MXU matmul for up and gate (weights interleaved per strip).
    ug = jnp.dot(x, wug_ref[...], preferred_element_type=jnp.float32)     # (tm, 2*tk_ff)
    up = ug[:, :tk_ff]                                                    # lane-aligned slice
    gate = ug[:, tk_ff:]
    # SiLU + gating in f32 (VPU + EUP). Dropout is eval-mode identity.
    h = up * (gate * jax.nn.sigmoid(gate))                                # (tm, tk_ff)
    acc_ref[...] += jnp.dot(h.astype(wd_ref.dtype), wd_ref[...],
                            preferred_element_type=jnp.float32)           # (tm, d_model)

    @pl.when(k == pl.num_programs(1) - 1)
    def _finalize():
        o_ref[...] = acc_ref[...].astype(o_ref.dtype)


# ----------------------------------------------------------------------------- wrappers

def prepare_swiglu_weights(w_up, w_gate, w_down, b_down, *,
                           compute_dtype=jnp.bfloat16, tk_ff=None):
    """One-time weight prep (cast, pad, per-strip interleave of up/gate).

    Weights are stored as [in, out] (i.e. PyTorch W.T), so the kernel computes x @ W.
    Call this ONCE outside the hot path and reuse the result.
    """
    d_model, dff = w_up.shape
    assert w_gate.shape == (d_model, dff)
    assert w_down.shape == (dff, d_model)

    defaults = _gen_defaults(d_model)
    if tk_ff is None:
        tk_ff, f_pad = _pick_tk_ff(dff, defaults["tk_ff_max"])
    else:
        assert tk_ff % 128 == 0, "tk_ff must be a multiple of 128"
        f_pad = _round_up(dff, tk_ff)

    wu = w_up.astype(compute_dtype)
    wg = w_gate.astype(compute_dtype)
    wd = w_down.astype(compute_dtype)
    if f_pad != dff:
        # Zero-padded dff columns give up=0 -> h=0, so they contribute nothing.
        wu = jnp.pad(wu, ((0, 0), (0, f_pad - dff)))
        wg = jnp.pad(wg, ((0, 0), (0, f_pad - dff)))
        wd = jnp.pad(wd, ((0, f_pad - dff), (0, 0)))

    n_strips = f_pad // tk_ff
    # Interleave per strip: w_ug[:, 2k*tk_ff : 2k*tk_ff+tk_ff] = up strip k,
    #                       w_ug[:, 2k*tk_ff+tk_ff : (2k+2)*tk_ff] = gate strip k.
    w_ug = jnp.stack(
        [wu.reshape(d_model, n_strips, tk_ff), wg.reshape(d_model, n_strips, tk_ff)],
        axis=2,
    ).reshape(d_model, n_strips * 2 * tk_ff)

    b2d = b_down.reshape(1, d_model).astype(jnp.float32)

    return dict(w_ug=w_ug, w_down=wd, bias=b2d,
                d_model=d_model, dff=dff, f_pad=f_pad, tk_ff=tk_ff,
                compute_dtype=compute_dtype)


def swiglu_ffn_prepared(x, prep, *, tm=None, vmem_limit_bytes=None):
    """x: (..., d_model); prep: output of prepare_swiglu_weights()."""
    orig_shape = x.shape
    out_dtype = x.dtype
    d_model = prep["d_model"]
    assert orig_shape[-1] == d_model

    tk_ff = prep["tk_ff"]
    f_pad = prep["f_pad"]
    compute_dtype = prep["compute_dtype"]
    defaults = _gen_defaults(d_model)
    if vmem_limit_bytes is None:
        vmem_limit_bytes = defaults["vmem_limit"]

    x2d = x.reshape(-1, d_model)
    M = x2d.shape[0]

    if tm is None:
        tm = _pick_tm(M, defaults["tm_max"])
        # Shrink tm if the estimated working set overshoots the VMEM budget.
        cd_b = jnp.dtype(compute_dtype).itemsize
        out_b = jnp.dtype(out_dtype).itemsize
        budget = int(0.8 * vmem_limit_bytes)
        while tm > 64 and _est_vmem_bytes(tm, tk_ff, d_model, cd_b, out_b) > budget:
            tm = max(64, _round_up(tm // 2, 16))

    m_pad = _round_up(M, tm)
    xc = x2d.astype(compute_dtype)
    if m_pad != M:
        xc = jnp.pad(xc, ((0, m_pad - M), (0, 0)))   # pad rows are sliced off below

    grid = (m_pad // tm, f_pad // tk_ff)
    kernel = functools.partial(swiglu_ffn_kernel, tk_ff=tk_ff)

    out = pl.pallas_call(
        kernel,
        out_shape=jax.ShapeDtypeStruct((m_pad, d_model), out_dtype),
        grid_spec=pltpu.PrefetchScalarGridSpec(
            num_scalar_prefetch=0,
            grid=grid,
            in_specs=[
                pl.BlockSpec((tm, d_model), lambda i, k: (i, 0)),        # x rows
                pl.BlockSpec((d_model, 2 * tk_ff), lambda i, k: (0, k)),  # fused up+gate strip
                pl.BlockSpec((tk_ff, d_model), lambda i, k: (k, 0)),     # down_proj strip
                pl.BlockSpec((1, d_model), lambda i, k: (0, 0)),         # down_proj bias
            ],
            out_specs=pl.BlockSpec((tm, d_model), lambda i, k: (i, 0)),
            scratch_shapes=[pltpu.VMEM((tm, d_model), jnp.float32)],     # f32 accumulator
        ),
        compiler_params=pltpu.CompilerParams(
            dimension_semantics=("parallel", "arbitrary"),
            vmem_limit_bytes=vmem_limit_bytes,
        ),
    )(xc, prep["w_ug"], prep["w_down"], prep["bias"])

    if m_pad != M:
        out = out[:M]
    return out.reshape(orig_shape)


def swiglu_ffn(x, w_up, w_gate, w_down, b_down, *,
               compute_dtype=jnp.bfloat16, tm=None, tk_ff=None,
               vmem_limit_bytes=None):
    """Convenience wrapper (re-prepares weights per call; prefer the prepared path)."""
    prep = prepare_swiglu_weights(w_up, w_gate, w_down, b_down,
                                  compute_dtype=compute_dtype, tk_ff=tk_ff)
    return swiglu_ffn_prepared(x, prep, tm=tm, vmem_limit_bytes=vmem_limit_bytes)


def reference_swiglu(x, w_up, w_gate, w_down, b_down):
    up = x @ w_up
    gate = x @ w_gate
    h = up * (gate * jax.nn.sigmoid(gate))
    return h @ w_down + b_down


# ----------------------------------------------------------------------------- demo / tests

if __name__ == "__main__":
    # Small shapes consistent with the module: batch=2, seq=8, d_model=32, dff=64.
    # (d_model=32 < 128 means lane-masked output stores — toy shape only; real
    # d_model should be a multiple of 128.)
    batch, seq, d_model, dff = 2, 8, 32, 64
    key = jax.random.PRNGKey(0)
    kx, ku, kg, kd, kb = jax.random.split(key, 5)

    x = jax.random.normal(kx, (batch, seq, d_model), dtype=jnp.float32)
    # PyTorch Linear weights are (out, in); here stored transposed as (in, out).
    w_up = jax.random.normal(ku, (d_model, dff), dtype=jnp.float32) * 0.05
    w_gate = jax.random.normal(kg, (d_model, dff), dtype=jnp.float32) * 0.05
    w_down = jax.random.normal(kd, (dff, d_model), dtype=jnp.float32) * 0.05
    b_down = jax.random.normal(kb, (d_model,), dtype=jnp.float32) * 0.05

    ref = reference_swiglu(x, w_up, w_gate, w_down, b_down)

    # 1) fp32 compute path, prepared weights reused across calls: tight check.
    prep_f32 = prepare_swiglu_weights(w_up, w_gate, w_down, b_down,
                                      compute_dtype=jnp.float32)
    out_f32 = jax.block_until_ready(swiglu_ffn_prepared(x, prep_f32))
    assert out_f32.shape == (batch, seq, d_model)
    assert jnp.allclose(out_f32, ref, atol=1e-5, rtol=1e-5), "fp32 mismatch vs reference"
    # second call with the same prepared weights (hot-path usage)
    out_f32b = jax.block_until_ready(swiglu_ffn_prepared(x, prep_f32))
    assert jnp.allclose(out_f32b, ref, atol=1e-5, rtol=1e-5)

    # 2) bf16 compute path (default / fast path): looser tolerance vs fp32 reference.
    out_bf16 = jax.block_until_ready(swiglu_ffn(x, w_up, w_gate, w_down, b_down))
    assert out_bf16.shape == (batch, seq, d_model)
    assert jnp.allclose(out_bf16, ref, atol=3e-2, rtol=3e-2), "bf16 mismatch vs reference"

    # 3) Padding path: M not a multiple of the row tile, dff=600 (pads to 640,
    #    5 strips of 128) — exercises the multi-strip reduction + zero pads.
    b2, s2, dm2, df2 = 3, 5, 32, 600
    k2 = jax.random.split(jax.random.PRNGKey(1), 5)
    x2 = jax.random.normal(k2[0], (b2, s2, dm2), dtype=jnp.float32)
    wu2 = jax.random.normal(k2[1], (dm2, df2), dtype=jnp.float32) * 0.05
    wg2 = jax.random.normal(k2[2], (dm2, df2), dtype=jnp.float32) * 0.05
    wd2 = jax.random.normal(k2[3], (df2, dm2), dtype=jnp.float32) * 0.05
    bd2 = jax.random.normal(k2[4], (dm2,), dtype=jnp.float32) * 0.05
    out2 = jax.block_until_ready(
        swiglu_ffn(x2, wu2, wg2, wd2, bd2, compute_dtype=jnp.float32))
    ref2 = reference_swiglu(x2, wu2, wg2, wd2, bd2)
    assert out2.shape == (b2, s2, dm2)
    assert jnp.allclose(out2, ref2, atol=1e-5, rtol=1e-5), "padded-path mismatch vs reference"

    # 4) Multiple row tiles with M padding (M=40, forced tm=16 -> grid rows=3, pad 8 rows).
    b3, s3 = 5, 8
    x3 = jax.random.normal(jax.random.PRNGKey(2), (b3, s3, d_model), dtype=jnp.float32)
    out3 = jax.block_until_ready(
        swiglu_ffn(x3, w_up, w_gate, w_down, b_down, compute_dtype=jnp.float32, tm=16))
    ref3 = reference_swiglu(x3, w_up, w_gate, w_down, b_down)
    assert out3.shape == (b3, s3, d_model)
    assert jnp.allclose(out3, ref3, atol=1e-5, rtol=1e-5), "multi-row-tile mismatch vs reference"

    print("KERNEL_OK")
</pallas_src>

<mosaic_0001>
module attributes {stable_mosaic.version = 11 : i64} {
  func.func @swiglu_ffn_kernel(%arg0: i32, %arg1: i32, %arg2: memref<16x32xf32, #tpu.memory_space<vmem>>, %arg3: memref<32x256xf32, #tpu.memory_space<vmem>>, %arg4: memref<128x32xf32, #tpu.memory_space<vmem>>, %arg5: memref<1x32xf32, #tpu.memory_space<vmem>>, %arg6: memref<16x32xf32, #tpu.memory_space<vmem>>, %arg7: memref<16x32xf32, #tpu.memory_space<vmem>>) attributes {dimension_semantics = [#tpu.dimension_semantics<parallel>, #tpu.dimension_semantics<arbitrary>], iteration_bounds = array<i64: 1, 1>, scalar_prefetch = 0 : i64, scratch_operands = 1 : i64, tpu.core_type = #tpu.core_type<tc>, window_params = [{transform_indices = @transform_0, window_bounds = array<i64: 16, 32>}, {transform_indices = @transform_1, window_bounds = array<i64: 32, 256>}, {transform_indices = @transform_2, window_bounds = array<i64: 128, 32>}, {pipeline_mode = #tpu.pipeline_mode<synchronous>, transform_indices = @transform_3, window_bounds = array<i64: 1, 32>}, {transform_indices = @transform_4, window_bounds = array<i64: 16, 32>}]} {
    %c0_i32 = arith.constant 0 : i32
    %0 = arith.cmpi eq, %arg1, %c0_i32 : i32
    %1 = arith.extui %0 : i1 to i32
    %c0_i32_0 = arith.constant 0 : i32
    %2 = arith.cmpi ne, %1, %c0_i32_0 : i32
    scf.if %2 {
      %c0_14 = arith.constant 0 : index
      %c0_15 = arith.constant 0 : index
      %23 = vector.load %arg5[%c0_14, %c0_15] : memref<1x32xf32, #tpu.memory_space<vmem>>, vector<1x32xf32>
      %24 = vector.shape_cast %23 : vector<1x32xf32> to vector<1x32xf32>
      %25 = vector.broadcast %24 : vector<1x32xf32> to vector<16x32xf32>
      %c0_16 = arith.constant 0 : index
      %c0_17 = arith.constant 0 : index
      %26 = vector.load %arg7[%c0_16, %c0_17] : memref<16x32xf32, #tpu.memory_space<vmem>>, vector<16x32xf32>
      tpu.vector_store %arg7[%c0_16, %c0_17], %25 {strides = array<i32>} : memref<16x32xf32, #tpu.memory_space<vmem>>, vector<16x32xf32>,
    } else {
    }
    %c0 = arith.constant 0 : index
    %c0_1 = arith.constant 0 : index
    %3 = vector.load %arg2[%c0, %c0_1] : memref<16x32xf32, #tpu.memory_space<vmem>>, vector<16x32xf32>
    %c0_2 = arith.constant 0 : index
    %c0_3 = arith.constant 0 : index
    %4 = vector.load %arg3[%c0_2, %c0_3] : memref<32x256xf32, #tpu.memory_space<vmem>>, vector<32x256xf32>
    %cst = arith.constant dense<0.000000e+00> : vector<16x256xf32>
    %5 = tpu.matmul %3, %4, %cst {dimension_numbers = #tpu.dot_dimension_numbers<[1], [0], [0], [1], [0, 0, 1, 1], [], []>} : vector<16x32xf32>, vector<32x256xf32>, vector<16x256xf32> -> vector<16x256xf32>
    %6 = vector.extract_strided_slice %5 {offsets = [0, 0], sizes = [16, 128], strides = [1, 1]} : vector<16x256xf32> to vector<16x128xf32>
    %7 = vector.extract_strided_slice %5 {offsets = [0, 128], sizes = [16, 128], strides = [1, 1]} : vector<16x256xf32> to vector<16x128xf32>
    %8 = arith.negf %7 : vector<16x128xf32>
    %9 = math.exp %8 : vector<16x128xf32>
    %cst_4 = arith.constant 1.000000e+00 : f32
    %10 = vector.broadcast %cst_4 : f32 to vector<16x128xf32>
    %11 = arith.addf %10, %9 : vector<16x128xf32>
    %12 = arith.divf %10, %11 : vector<16x128xf32>
    %13 = arith.mulf %7, %12 : vector<16x128xf32>
    %14 = arith.mulf %6, %13 : vector<16x128xf32>
    %c0_5 = arith.constant 0 : index
    %c0_6 = arith.constant 0 : index
    %15 = vector.load %arg7[%c0_5, %c0_6] : memref<16x32xf32, #tpu.memory_space<vmem>>, vector<16x32xf32>
    %c0_7 = arith.constant 0 : index
    %c0_8 = arith.constant 0 : index
    %16 = vector.load %arg4[%c0_7, %c0_8] : memref<128x32xf32, #tpu.memory_space<vmem>>, vector<128x32xf32>
    %cst_9 = arith.constant dense<0.000000e+00> : vector<16x32xf32>
    %17 = tpu.matmul %14, %16, %cst_9 {dimension_numbers = #tpu.dot_dimension_numbers<[1], [0], [0], [1], [0, 0, 1, 1], [], []>} : vector<16x128xf32>, vector<128x32xf32>, vector<16x32xf32> -> vector<16x32xf32>
    %18 = arith.addf %15, %17 : vector<16x32xf32>
    %c0_10 = arith.constant 0 : index
    %c0_11 = arith.constant 0 : index
    %19 = vector.load %arg7[%c0_10, %c0_11] : memref<16x32xf32, #tpu.memory_space<vmem>>, vector<16x32xf32>
    tpu.vector_store %arg7[%c0_10, %c0_11], %18 {strides = array<i32>} : memref<16x32xf32, #tpu.memory_space<vmem>>, vector<16x32xf32>,
    %c0_i32_12 = arith.constant 0 : i32
    %20 = arith.cmpi eq, %arg1, %c0_i32_12 : i32
    %21 = arith.extui %20 : i1 to i32
    %c0_i32_13 = arith.constant 0 : i32
    %22 = arith.cmpi ne, %21, %c0_i32_13 : i32
    scf.if %22 {
      %c0_14 = arith.constant 0 : index
      %c0_15 = arith.constant 0 : index
      %23 = vector.load %arg7[%c0_14, %c0_15] : memref<16x32xf32, #tpu.memory_space<vmem>>, vector<16x32xf32>
      %c0_16 = arith.constant 0 : index
      %c0_17 = arith.constant 0 : index
      %24 = vector.load %arg6[%c0_16, %c0_17] : memref<16x32xf32, #tpu.memory_space<vmem>>, vector<16x32xf32>
      tpu.vector_store %arg6[%c0_16, %c0_17], %23 {strides = array<i32>} : memref<16x32xf32, #tpu.memory_space<vmem>>, vector<16x32xf32>,
    } else {
    }
    return
  }
  func.func @transform_0(%arg0: i32, %arg1: i32) -> (i32, i32) {
    %c0_i32 = arith.constant 0 : i32
    %c0_i32_0 = arith.constant 0 : i32
    return %arg0, %c0_i32 : i32, i32
  }
  func.func @transform_1(%arg0: i32, %arg1: i32) -> (i32, i32) {
    %c0_i32 = arith.constant 0 : i32
    %c0_i32_0 = arith.constant 0 : i32
    return %c0_i32, %arg1 : i32, i32
  }
  func.func @transform_2(%arg0: i32, %arg1: i32) -> (i32, i32) {
    %c0_i32 = arith.constant 0 : i32
    %c0_i32_0 = arith.constant 0 : i32
    return %arg1, %c0_i32 : i32, i32
  }
  func.func @transform_3(%arg0: i32, %arg1: i32) -> (i32, i32) {
    %c0_i32 = arith.constant 0 : i32
    %c0_i32_0 = arith.constant 0 : i32
    %c0_i32_1 = arith.constant 0 : i32
    return %c0_i32, %c0_i32_0 : i32, i32
  }
  func.func @transform_4(%arg0: i32, %arg1: i32) -> (i32, i32) {
    %c0_i32 = arith.constant 0 : i32
    %c0_i32_0 = arith.constant 0 : i32
    return %arg0, %c0_i32 : i32, i32
  }
}

</mosaic_0001>

<bundles_post_ra>
// kernel: tpu_custom_call.1
= control target key start
LH: loop header
LB: loop body
LE: loop exit
PB: predicated region body
PF: predicated region fallthrough
CT: control target
= control target key end

     0   :  { %v354_v4 = vmov 0.0   ;;  %s475_s0 = inlined_call_operand.vmem [shape: f32[16,32], index: 0, kind: input, shape index: {}]   ;;  %s476_s1 = inlined_call_operand.vmem [shape: f32[32,256], index: 1, kind: input, shape index: {}]   ;;  %s477_s2 = inlined_call_operand.vmem [shape: f32[128,32], index: 2, kind: input, shape index: {}]   ;;  %s478_s3 = inlined_call_operand.vmem [shape: f32[1,32], index: 3, kind: input, shape index: {}]   ;;  %s479_s4 = inlined_call_operand.hbm [shape: f32[16,32], index: 4, kind: output, shape index: {}]  }
   0x1   :  { %v41_v0 = vld [vmem:[%s476_s1 + $0x38] sm:$0xff]  ;;  %v40_v1 = vld [vmem:[%s476_s1 + $0x30] sm:$0xff]  ;;  %v39_v2 = vld [vmem:[%s476_s1 + $0x28] sm:$0xff]  ;;  %113 = vmatprep.mubr.f32.mxu0 %v354_v4 }
   0x2   :  { %73 = vmatprep.subr.mxu0 %v41_v0  ;;  %v38_v3 = vld [vmem:[%s476_s1 + $0x20] sm:$0xff]  ;;  %v37_v5 = vld [vmem:[%s476_s1 + $0x18] sm:$0xff]  ;;  %v36_v6 = vld [vmem:[%s476_s1 + $0x10] sm:$0xff] }
   0x3   :  { %74 = vmatpush1.msra.mxu0 %v40_v1 }
   0x4   :  { %75 = vmatprep.subr.mxu0 %v39_v2 }
   0x5   :  { %9 = vsyncpa [#allocation4], 0  ;;  %76 = vmatpush1.msra.mxu0 %v38_v3  ;;  %v35_v7 = vld [vmem:[%s476_s1 + $0x8] sm:$0xff]  ;;  %v34_v8 = vld [vmem:[%s476_s1] sm:$0xff]  ;;  %vm29_vm0 = vcmask 261120  }
   0x6   :  { %77 = vmatprep.subr.mxu0 %v37_v5  ;;  %v32_v9 = vld [vmem:[%s475_s0] sm:$0xff]  ;;  %v33_v10 = vld [vmem:[%s475_s0 + $0x8] sm:$0xff]  ;;  %v159_v11 = vld [vmem:[%s477_s2 + $0x78] sm:$0xff] }
   0x7   :  { %78 = vmatpush1.msra.mxu0 %v36_v6  ;;  %285 = vmatprep.subr.mxu1 %v159_v11  ;;  %v158_v12 = vld [vmem:[%s477_s2 + $0x70] sm:$0xff]  ;;  %v157_v13 = vld [vmem:[%s477_s2 + $0x68] sm:$0xff]  ;;  %v156_v14 = vld [vmem:[%s477_s2 + $0x60] sm:$0xff] }
   0x8   :  { %79 = vmatprep.subr.mxu0 %v35_v7  ;;  %286 = vmatpush3.msra.mxu1 %v159_v11  ;;  %v155_v15 = vld [vmem:[%s477_s2 + $0x58] sm:$0xff]  ;;  %v154_v16 = vld [vmem:[%s477_s2 + $0x50] sm:$0xff]  ;;  %v153_v17 = vld [vmem:[%s477_s2 + $0x48] sm:$0xff] }
   0x9   :  { %80 = vmatpush1.msra.mxu0 %v34_v8  ;;  %287 = vmatprep.subr.mxu1 %v158_v12  ;;  %v152_v18 = vld [vmem:[%s477_s2 + $0x40] sm:$0xff]  ;;  %v151_v19 = vld [vmem:[%s477_s2 + $0x38] sm:$0xff]  ;;  %v150_v20 = vld [vmem:[%s477_s2 + $0x30] sm:$0xff] }
   0xa   :  { %263 = vmatmul.mubr.msk.f32.vlgmr.msra.gmra.mxu0 %vm29_vm0, %v32_v9  ;;  %288 = vmatpush3.msra.mxu1 %v158_v12  ;;  %v149_v21 = vld [vmem:[%s477_s2 + $0x28] sm:$0xff]  ;;  %v148_v22 = vld [vmem:[%s477_s2 + $0x20] sm:$0xff]  ;;  %v147_v23 = vld [vmem:[%s477_s2 + $0x18] sm:$0xff] }
   0xb   :  { %119 = vmatprep.mubr.f32.mxu0 %v354_v4  ;;  %289 = vmatprep.subr.mxu1 %v157_v13  ;;  %v146_v24 = vld [vmem:[%s477_s2 + $0x10] sm:$0xff]  ;;  %v145_v25 = vld [vmem:[%s477_s2 + $0x8] sm:$0xff]  ;;  %v144_v26 = vld [vmem:[%s477_s2] sm:$0xff]  ;;  %s355_s2 = smov [#allocation3]  }
   0xc   :  { %290 = vmatpush3.msra.mxu1 %v157_v13  ;;  %v262_v27 = vld [vmem:[%s478_s3] ss:$0 sm:$0xff]  ;;  %s251_s3 = sshll.u32 %s355_s2, 4  ;;  %s252_s3 = int_to_ptr.vmem [resolvable:$true] %s251_s3 }
   0xd   :  { %291 = vmatprep.subr.mxu1 %v156_v14  ;;  %31 = vst.msk [vmem:[#allocation2 + $0x8] sm:$0xff] %vm29_vm0, %v262_v27  ;;  %30 = vst.msk [vmem:[#allocation2] sm:$0xff] %vm29_vm0, %v262_v27  ;;  %s332_s0 = scalar_lea.vmem %s252_s3, 256  ;;  %p337_p1 = scmp.lt.s32.totalorder %s252_s3, %s252_s3 }
   0xe   :  { %264 = vmatmul.mubr.msk.f32.gmra.mxu0 %vm29_vm0, %v33_v10  ;;  %292 = vmatpush3.msra.mxu1 %v156_v14  ;;  %p333_p0 = scmp.ne.s32.totalorder %s252_s3, %s332_s0  ;;  %p338_p2 = scmp.lt.s32.totalorder %s332_s0, %s332_s0 }
   0xf   :  { %293 = vmatprep.subr.mxu1 %v155_v15 }
  0x10   :  { %294 = vmatpush3.msra.mxu1 %v155_v15  ;;  %p339_p3 = por %p338_p2, %p337_p1 }
  0x11   :  { %295 = vmatprep.subr.mxu1 %v154_v16 }
  0x12   :  { %296 = vmatpush3.msra.mxu1 %v154_v16  ;;  %p340_p4 = pnand %p339_p3, %p333_p0 }
  0x13   :  { %297 = vmatprep.subr.mxu1 %v153_v17 }
  0x14   :  { %298 = vmatpush3.msra.mxu1 %v153_v17  ;;  %v143_v44 = vld [vmem:[#allocation2 + $0x8] sm:$0xff]  ;;  %v142_v46 = vld [vmem:[#allocation2] sm:$0xff] }
  0x15   :  { %299 = vmatprep.subr.mxu1 %v152_v18 }
  0x16   :  { %300 = vmatpush3.msra.mxu1 %v152_v18 }
  0x17   :  { %301 = vmatprep.subr.mxu1 %v151_v19 }
  0x18   :  { %302 = vmatpush3.msra.mxu1 %v151_v19 }
  0x19   :  { %303 = vmatprep.subr.mxu1 %v150_v20 }
  0x1a   :  { %304 = vmatpush3.msra.mxu1 %v150_v20 }
  0x1b   :  { %305 = vmatprep.subr.mxu1 %v149_v21 }
  0x1c   :  { %306 = vmatpush3.msra.mxu1 %v149_v21 }
  0x1d   :  { %307 = vmatprep.subr.mxu1 %v148_v22 }
  0x1e   :  { %308 = vmatpush3.msra.mxu1 %v148_v22 }
  0x1f   :  { %309 = vmatprep.subr.mxu1 %v147_v23 }
  0x20   :  { %310 = vmatpush3.msra.mxu1 %v147_v23 }
  0x21   :  { %311 = vmatprep.subr.mxu1 %v146_v24 }
  0x22   :  { %312 = vmatpush3.msra.mxu1 %v146_v24 }
  0x23   :  { %313 = vmatprep.subr.mxu1 %v145_v25 }
  0x24   :  { %314 = vmatpush3.msra.mxu1 %v145_v25 }
  0x25   :  { %315 = vmatprep.subr.mxu1 %v144_v26 }
  0x26   :  { %316 = vmatpush3.msra.mxu1 %v144_v26 }
  0xca   :  { %v115_v28 = vpop.f32.mrf.mxu0 }
  0xcc   :  { %v117_v29 = vpop.f32.mrf.mxu0 }
  0xcd   :  { %v265_v30 = vmul.f32 -1.442695, %v117_v29 }
  0xce   :  { %v121_v31 = vpop.f32.mrf.mxu0 }
  0xcf   :  { %324 = vpow2.f32 %v265_v30 }
  0xd0   :  { %v123_v32 = vpop.f32.mrf.mxu0 }
  0xd1   :  { %v266_v33 = vmul.f32 -1.442695, %v123_v32 }
  0xd3   :  { %326 = vpow2.f32 %v266_v33 }
  0xdc   :  { %v325_v34 = vpop.eup %324 }
  0xdd   :  { %v132_v35 = vadd.f32 1.0, %v325_v34 }
  0xdf   :  { %328 = vrcp.f32 %v132_v35 }
  0xe0   :  { %v327_v36 = vpop.eup %326 }
  0xe1   :  { %v133_v37 = vadd.f32 1.0, %v327_v36 }
  0xe3   :  { %330 = vrcp.f32 %v133_v37 }
  0xec   :  { %v329_v38 = vpop.eup %328 }
  0xed   :  { %v138_v39 = vmul.f32 %v329_v38, %v117_v29 }
  0xef   :  { %v140_v40 = vmul.f32 %v138_v39, %v115_v28 }
  0xf0   :  { %v331_v41 = vpop.eup %330 }
  0xf1   :  { %v139_v42 = vmul.f32 %v331_v41, %v123_v32  ;;  %317 = vmatprep.mubr.f32.mxu1 %v140_v40 }
  0xf3   :  { %v141_v43 = vmul.f32 %v139_v42, %v121_v31 }
  0xf5   :  { %318 = vmatmul.mubr.f32.vlgmr.msra.gmra.mxu1 %v141_v43 }
 0x1b5   :  { %v319_v45 = vpop.f32.mrf.mxu1 }
 0x1b6   :  { %v236_v47 = vadd.f32 %v319_v45, %v143_v44 }
 0x1b7   :  { %v226_v48 = vpop.f32.mrf.mxu1 }
 0x1b8   :  { %238 = vst.msk [vmem:[#allocation2 + $0x8] sm:$0xff] %vm29_vm0, %v236_v47  ;;  %v235_v49 = vadd.f32 %v226_v48, %v142_v46 }
 0x1ba   :  { %237 = vst.msk [vmem:[#allocation2] sm:$0xff] %vm29_vm0, %v235_v49 }
 0x1bf   :  { %v243_v50 = vld [vmem:[#allocation2 + $0x8] sm:$0xff] }
 0x1c0   :  { %245 = vst.msk [vmem:[#allocation3 + $0x8] sm:$0xff] %vm29_vm0, %v243_v50 }
 0x1c1   :  { %v242_v51 = vld [vmem:[#allocation2] sm:$0xff] }
 0x1c2   :  { %244 = vst.msk [vmem:[#allocation3] sm:$0xff] %vm29_vm0, %v242_v51 }
 0x1c3   :  { %343 = shalt.err (!%p340_p4)
}
 0x1c4   :  { %s356_s14 = smov 128   ;;  %s357_s15 = smov 8  }
 0x1c5   :  { %257 = dma.vmem_to_hbm [thread:$0]  %s252_s3, 256, %s479_s4, [#allocation4], %s356_s14, %s356_s14, %s357_s15  }
 0x1c6   :  { %352 = dma.done.wait [#allocation4], 256  }
 0x1c7   :  { %353 = vsyncadd [#allocation4], 4294967040 }
 0x1c8   :  { %261 = vsyncpa [#allocation4], 1 }

</bundles_post_ra>
